<compile_context>
chip_gen: v6e
topology: v6e:2x2x1
jax: 0.10.0
libtpu: 0.0.40
codegen_flags: <defaults>
</compile_context>

<pallas_src>
import jax
import jax.numpy as jnp
from jax.experimental import pallas as pl
from jax.experimental.pallas import tpu as pltpu


def graph_conv_kernel(x_ref, kc_ref, beff_ref, o_ref):
    """One (batch, frame-tile) block.

    x_ref    : (1, C_in, F_tile, N)   input block, native module layout
    kc_ref   : (C_in, N, C_out*N)     fused operator (BN-scale * sum_s W_s (x) A_s)
    beff_ref : (1, C_out*N)           fused additive term (conv bias through A + BN shift)
    o_ref    : (1, C_out, F_tile, N)  output block, native module layout
    """
    c_in = x_ref.shape[1]
    n = x_ref.shape[3]
    c_out = o_ref.shape[1]

    # y[f, o*N + m] = sum_{c,n} x[c, f, n] * kc[c, n, o*N + m]
    # Lane-dense (F_tile, C_out*N) f32 accumulator; the contraction over c is a short
    # unrolled loop of MXU matmuls (K = N each) -- no in-kernel transposes required.
    y = jnp.dot(x_ref[0, 0], kc_ref[0], preferred_element_type=jnp.float32)
    for c in range(1, c_in):
        y += jnp.dot(x_ref[0, c], kc_ref[c], preferred_element_type=jnp.float32)

    # Folded conv-bias + eval-mode BatchNorm shift, then ReLU (all f32 on the VPU).
    y = jnp.maximum(y + beff_ref[...], 0.0)

    # Scatter the lane-dense result back into the native (C_out, F_tile, N) block.
    for o in range(c_out):
        o_ref[0, o] = y[:, o * n:(o + 1) * n].astype(o_ref.dtype)


def _choose_f_tile(F: int, max_tile: int = 512) -> int:
    """Largest frame tile that keeps BlockSpec legal ((8,128) rule) and divides F."""
    if F <= max_tile:
        return F
    divs = [t for t in range(8, max_tile + 1, 8) if F % t == 0]
    return divs[-1] if divs else F


def graph_convolution(x, weight, bias, A, bn_gamma, bn_beta, bn_mean, bn_var,
                      eps=1e-5, max_f_tile=512):
    """x: (B, C_in, F, N); weight: (S*C_out, C_in); bias: (S*C_out,); A: (S, N, N).
    Returns (B, C_out, F, N), matching the PyTorch module in eval mode."""
    B, C_in, F, N = x.shape
    S = A.shape[0]
    C_out = weight.shape[0] // S
    f32 = jnp.float32

    A32 = A.astype(f32)
    W3 = weight.reshape(S, C_out, C_in).astype(f32)
    b2 = bias.reshape(S, C_out).astype(f32)

    # Eval-mode BatchNorm folded to per-channel scale/shift.
    scale = bn_gamma.astype(f32) / jnp.sqrt(bn_var.astype(f32) + eps)
    shift = bn_beta.astype(f32) - bn_mean.astype(f32) * scale

    # Fused operator: kc[c, n, o*N+m] = scale[o] * sum_s W_s[o,c] * A[s,n,m]
    kc = jnp.einsum('soc,snm->cnom', W3, A32)
    kc = (kc * scale[None, None, :, None]).reshape(C_in, N, C_out * N)

    # Fused additive term: beff[o*N+m] = scale[o]*sum_s b_s[o]*sum_n A[s,n,m] + shift[o]
    a_colsum = jnp.sum(A32, axis=1)                                   # (S, N)
    beff = scale[:, None] * jnp.einsum('so,sm->om', b2, a_colsum) + shift[:, None]
    beff = beff.reshape(1, C_out * N)

    f_tile = _choose_f_tile(F, max_f_tile)
    grid = (B, F // f_tile)

    out = pl.pallas_call(
        graph_conv_kernel,
        out_shape=jax.ShapeDtypeStruct((B, C_out, F, N), x.dtype),
        grid=grid,
        in_specs=[
            # Streaming operand: native-layout block, double-buffered by Pallas.
            pl.BlockSpec((1, C_in, f_tile, N), lambda b, f: (b, 0, f, 0)),
            # Constant-index parameter blocks: fetched once, resident across the grid.
            pl.BlockSpec((C_in, N, C_out * N), lambda b, f: (0, 0, 0)),
            pl.BlockSpec((1, C_out * N), lambda b, f: (0, 0)),
        ],
        out_specs=pl.BlockSpec((1, C_out, f_tile, N), lambda b, f: (b, 0, f, 0)),
        compiler_params=pltpu.CompilerParams(
            dimension_semantics=("parallel", "parallel")),
    )(x, kc, beff)
    return out


def _reference(x, weight, bias, A, bn_gamma, bn_beta, bn_mean, bn_var, eps=1e-5):
    """Pure-JAX reference matching the PyTorch forward (eval-mode BN)."""
    B, C_in, F, N = x.shape
    S = A.shape[0]
    C_out = weight.shape[0] // S
    # Conv2d with kernel (1,1): y[b, o, f, n] = sum_c W[o, c] x[b, c, f, n] + bias[o]
    y = jnp.einsum('bcfn,oc->bofn', x, weight) + bias[None, :, None, None]
    y = y.reshape(B, S, C_out, F, N)
    y = jnp.einsum('bscfn,snm->bcfm', y, A)
    scale = bn_gamma / jnp.sqrt(bn_var + eps)
    shift = bn_beta - bn_mean * scale
    y = y * scale[None, :, None, None] + shift[None, :, None, None]
    return jnp.maximum(y, 0.0)


if __name__ == "__main__":
    # Small deterministic problem: batch=2, in_channels=4, out_channels=8,
    # frames=16, nodes=16, num_subsets=3.
    B, C_in, C_out, F, N, S = 2, 4, 8, 16, 16, 3

    key = jax.random.PRNGKey(0)
    kx, kw, kb, ka, kg, kbe, km, kv = jax.random.split(key, 8)

    x = jax.random.normal(kx, (B, C_in, F, N), dtype=jnp.float32)

    # Conv2d(in_channels, out_channels * S, kernel=(1,1)) parameters, flattened over
    # the trivial spatial kernel dims.
    weight = 0.2 * jax.random.normal(kw, (S * C_out, C_in), dtype=jnp.float32)
    bias = 0.1 * jax.random.normal(kb, (S * C_out,), dtype=jnp.float32)

    # Synthetic normalized adjacency (S, N, N), deterministic.
    A_raw = jax.random.uniform(ka, (S, N, N), dtype=jnp.float32)
    A = A_raw / jnp.sum(A_raw, axis=-1, keepdims=True)

    # BatchNorm2d(out_channels) parameters (eval mode).
    bn_gamma = 1.0 + 0.1 * jax.random.normal(kg, (C_out,), dtype=jnp.float32)
    bn_beta = 0.1 * jax.random.normal(kbe, (C_out,), dtype=jnp.float32)
    bn_mean = 0.05 * jax.random.normal(km, (C_out,), dtype=jnp.float32)
    bn_var = 1.0 + 0.1 * jax.random.uniform(kv, (C_out,), dtype=jnp.float32)

    out = graph_convolution(x, weight, bias, A, bn_gamma, bn_beta, bn_mean, bn_var)
    out = jax.block_until_ready(out)

    ref = _reference(x, weight, bias, A, bn_gamma, bn_beta, bn_mean, bn_var)
    assert out.shape == (B, C_out, F, N)
    assert jnp.allclose(out, ref, atol=1e-4, rtol=1e-4), "mismatch vs JAX reference"

    print("KERNEL_OK")
</pallas_src>

<mosaic_0001>
module attributes {stable_mosaic.version = 11 : i64} {
  func.func @graph_conv_kernel(%arg0: i32, %arg1: i32, %arg2: memref<1x4x16x16xf32, #tpu.memory_space<vmem>>, %arg3: memref<4x16x128xf32, #tpu.memory_space<vmem>>, %arg4: memref<1x128xf32, #tpu.memory_space<vmem>>, %arg5: memref<1x8x16x16xf32, #tpu.memory_space<vmem>>) attributes {dimension_semantics = [#tpu.dimension_semantics<parallel>, #tpu.dimension_semantics<parallel>], iteration_bounds = array<i64: 2, 1>, scalar_prefetch = 0 : i64, scratch_operands = 0 : i64, tpu.core_type = #tpu.core_type<tc>, window_params = [{transform_indices = @transform_0, window_bounds = array<i64: 1, 4, 16, 16>}, {pipeline_mode = #tpu.pipeline_mode<synchronous>, transform_indices = @transform_1, window_bounds = array<i64: 4, 16, 128>}, {pipeline_mode = #tpu.pipeline_mode<synchronous>, transform_indices = @transform_2, window_bounds = array<i64: 1, 128>}, {transform_indices = @transform_3, window_bounds = array<i64: 1, 8, 16, 16>}]} {
    %c0 = arith.constant 0 : index
    %c0_0 = arith.constant 0 : index
    %c0_1 = arith.constant 0 : index
    %c0_2 = arith.constant 0 : index
    %0 = vector.load %arg2[%c0, %c0_0, %c0_1, %c0_2] : memref<1x4x16x16xf32, #tpu.memory_space<vmem>>, vector<1x1x16x16xf32>
    %1 = vector.shape_cast %0 : vector<1x1x16x16xf32> to vector<16x16xf32>
    %c0_3 = arith.constant 0 : index
    %c0_4 = arith.constant 0 : index
    %c0_5 = arith.constant 0 : index
    %2 = vector.load %arg3[%c0_3, %c0_4, %c0_5] : memref<4x16x128xf32, #tpu.memory_space<vmem>>, vector<1x16x128xf32>
    %3 = vector.shape_cast %2 : vector<1x16x128xf32> to vector<16x128xf32>
    %cst = arith.constant dense<0.000000e+00> : vector<16x128xf32>
    %4 = tpu.matmul %1, %3, %cst {dimension_numbers = #tpu.dot_dimension_numbers<[1], [0], [0], [1], [0, 0, 1, 1], [], []>} : vector<16x16xf32>, vector<16x128xf32>, vector<16x128xf32> -> vector<16x128xf32>
    %c0_6 = arith.constant 0 : index
    %c1 = arith.constant 1 : index
    %c0_7 = arith.constant 0 : index
    %c0_8 = arith.constant 0 : index
    %5 = vector.load %arg2[%c0_6, %c1, %c0_7, %c0_8] : memref<1x4x16x16xf32, #tpu.memory_space<vmem>>, vector<1x1x16x16xf32>
    %6 = vector.shape_cast %5 : vector<1x1x16x16xf32> to vector<16x16xf32>
    %c1_9 = arith.constant 1 : index
    %c0_10 = arith.constant 0 : index
    %c0_11 = arith.constant 0 : index
    %7 = vector.load %arg3[%c1_9, %c0_10, %c0_11] : memref<4x16x128xf32, #tpu.memory_space<vmem>>, vector<1x16x128xf32>
    %8 = vector.shape_cast %7 : vector<1x16x128xf32> to vector<16x128xf32>
    %cst_12 = arith.constant dense<0.000000e+00> : vector<16x128xf32>
    %9 = tpu.matmul %6, %8, %cst_12 {dimension_numbers = #tpu.dot_dimension_numbers<[1], [0], [0], [1], [0, 0, 1, 1], [], []>} : vector<16x16xf32>, vector<16x128xf32>, vector<16x128xf32> -> vector<16x128xf32>
    %10 = arith.addf %4, %9 : vector<16x128xf32>
    %c0_13 = arith.constant 0 : index
    %c2 = arith.constant 2 : index
    %c0_14 = arith.constant 0 : index
    %c0_15 = arith.constant 0 : index
    %11 = vector.load %arg2[%c0_13, %c2, %c0_14, %c0_15] : memref<1x4x16x16xf32, #tpu.memory_space<vmem>>, vector<1x1x16x16xf32>
    %12 = vector.shape_cast %11 : vector<1x1x16x16xf32> to vector<16x16xf32>
    %c2_16 = arith.constant 2 : index
    %c0_17 = arith.constant 0 : index
    %c0_18 = arith.constant 0 : index
    %13 = vector.load %arg3[%c2_16, %c0_17, %c0_18] : memref<4x16x128xf32, #tpu.memory_space<vmem>>, vector<1x16x128xf32>
    %14 = vector.shape_cast %13 : vector<1x16x128xf32> to vector<16x128xf32>
    %cst_19 = arith.constant dense<0.000000e+00> : vector<16x128xf32>
    %15 = tpu.matmul %12, %14, %cst_19 {dimension_numbers = #tpu.dot_dimension_numbers<[1], [0], [0], [1], [0, 0, 1, 1], [], []>} : vector<16x16xf32>, vector<16x128xf32>, vector<16x128xf32> -> vector<16x128xf32>
    %16 = arith.addf %10, %15 : vector<16x128xf32>
    %c0_20 = arith.constant 0 : index
    %c3 = arith.constant 3 : index
    %c0_21 = arith.constant 0 : index
    %c0_22 = arith.constant 0 : index
    %17 = vector.load %arg2[%c0_20, %c3, %c0_21, %c0_22] : memref<1x4x16x16xf32, #tpu.memory_space<vmem>>, vector<1x1x16x16xf32>
    %18 = vector.shape_cast %17 : vector<1x1x16x16xf32> to vector<16x16xf32>
    %c3_23 = arith.constant 3 : index
    %c0_24 = arith.constant 0 : index
    %c0_25 = arith.constant 0 : index
    %19 = vector.load %arg3[%c3_23, %c0_24, %c0_25] : memref<4x16x128xf32, #tpu.memory_space<vmem>>, vector<1x16x128xf32>
    %20 = vector.shape_cast %19 : vector<1x16x128xf32> to vector<16x128xf32>
    %cst_26 = arith.constant dense<0.000000e+00> : vector<16x128xf32>
    %21 = tpu.matmul %18, %20, %cst_26 {dimension_numbers = #tpu.dot_dimension_numbers<[1], [0], [0], [1], [0, 0, 1, 1], [], []>} : vector<16x16xf32>, vector<16x128xf32>, vector<16x128xf32> -> vector<16x128xf32>
    %22 = arith.addf %16, %21 : vector<16x128xf32>
    %c0_27 = arith.constant 0 : index
    %c0_28 = arith.constant 0 : index
    %23 = vector.load %arg4[%c0_27, %c0_28] : memref<1x128xf32, #tpu.memory_space<vmem>>, vector<1x128xf32>
    %24 = vector.broadcast %23 : vector<1x128xf32> to vector<16x128xf32>
    %25 = arith.addf %22, %24 : vector<16x128xf32>
    %cst_29 = arith.constant 0.000000e+00 : f32
    %26 = vector.broadcast %cst_29 : f32 to vector<16x128xf32>
    %27 = arith.maximumf %25, %26 : vector<16x128xf32>
    %28 = vector.extract_strided_slice %27 {offsets = [0, 0], sizes = [16, 16], strides = [1, 1]} : vector<16x128xf32> to vector<16x16xf32>
    %c0_30 = arith.constant 0 : index
    %c0_31 = arith.constant 0 : index
    %c0_32 = arith.constant 0 : index
    %c0_33 = arith.constant 0 : index
    %29 = vector.load %arg5[%c0_30, %c0_31, %c0_32, %c0_33] : memref<1x8x16x16xf32, #tpu.memory_space<vmem>>, vector<1x1x16x16xf32>
    %30 = vector.shape_cast %29 : vector<1x1x16x16xf32> to vector<16x16xf32>
    %31 = vector.shape_cast %28 : vector<16x16xf32> to vector<1x1x16x16xf32>
    tpu.vector_store %arg5[%c0_30, %c0_31, %c0_32, %c0_33], %31 {strides = array<i32>} : memref<1x8x16x16xf32, #tpu.memory_space<vmem>>, vector<1x1x16x16xf32>,
    %32 = vector.extract_strided_slice %27 {offsets = [0, 16], sizes = [16, 16], strides = [1, 1]} : vector<16x128xf32> to vector<16x16xf32>
    %c0_34 = arith.constant 0 : index
    %c1_35 = arith.constant 1 : index
    %c0_36 = arith.constant 0 : index
    %c0_37 = arith.constant 0 : index
    %33 = vector.load %arg5[%c0_34, %c1_35, %c0_36, %c0_37] : memref<1x8x16x16xf32, #tpu.memory_space<vmem>>, vector<1x1x16x16xf32>
    %34 = vector.shape_cast %33 : vector<1x1x16x16xf32> to vector<16x16xf32>
    %35 = vector.shape_cast %32 : vector<16x16xf32> to vector<1x1x16x16xf32>
    tpu.vector_store %arg5[%c0_34, %c1_35, %c0_36, %c0_37], %35 {strides = array<i32>} : memref<1x8x16x16xf32, #tpu.memory_space<vmem>>, vector<1x1x16x16xf32>,
    %36 = vector.extract_strided_slice %27 {offsets = [0, 32], sizes = [16, 16], strides = [1, 1]} : vector<16x128xf32> to vector<16x16xf32>
    %c0_38 = arith.constant 0 : index
    %c2_39 = arith.constant 2 : index
    %c0_40 = arith.constant 0 : index
    %c0_41 = arith.constant 0 : index
    %37 = vector.load %arg5[%c0_38, %c2_39, %c0_40, %c0_41] : memref<1x8x16x16xf32, #tpu.memory_space<vmem>>, vector<1x1x16x16xf32>
    %38 = vector.shape_cast %37 : vector<1x1x16x16xf32> to vector<16x16xf32>
    %39 = vector.shape_cast %36 : vector<16x16xf32> to vector<1x1x16x16xf32>
    tpu.vector_store %arg5[%c0_38, %c2_39, %c0_40, %c0_41], %39 {strides = array<i32>} : memref<1x8x16x16xf32, #tpu.memory_space<vmem>>, vector<1x1x16x16xf32>,
    %40 = vector.extract_strided_slice %27 {offsets = [0, 48], sizes = [16, 16], strides = [1, 1]} : vector<16x128xf32> to vector<16x16xf32>
    %c0_42 = arith.constant 0 : index
    %c3_43 = arith.constant 3 : index
    %c0_44 = arith.constant 0 : index
    %c0_45 = arith.constant 0 : index
    %41 = vector.load %arg5[%c0_42, %c3_43, %c0_44, %c0_45] : memref<1x8x16x16xf32, #tpu.memory_space<vmem>>, vector<1x1x16x16xf32>
    %42 = vector.shape_cast %41 : vector<1x1x16x16xf32> to vector<16x16xf32>
    %43 = vector.shape_cast %40 : vector<16x16xf32> to vector<1x1x16x16xf32>
    tpu.vector_store %arg5[%c0_42, %c3_43, %c0_44, %c0_45], %43 {strides = array<i32>} : memref<1x8x16x16xf32, #tpu.memory_space<vmem>>, vector<1x1x16x16xf32>,
    %44 = vector.extract_strided_slice %27 {offsets = [0, 64], sizes = [16, 16], strides = [1, 1]} : vector<16x128xf32> to vector<16x16xf32>
    %c0_46 = arith.constant 0 : index
    %c4 = arith.constant 4 : index
    %c0_47 = arith.constant 0 : index
    %c0_48 = arith.constant 0 : index
    %45 = vector.load %arg5[%c0_46, %c4, %c0_47, %c0_48] : memref<1x8x16x16xf32, #tpu.memory_space<vmem>>, vector<1x1x16x16xf32>
    %46 = vector.shape_cast %45 : vector<1x1x16x16xf32> to vector<16x16xf32>
    %47 = vector.shape_cast %44 : vector<16x16xf32> to vector<1x1x16x16xf32>
    tpu.vector_store %arg5[%c0_46, %c4, %c0_47, %c0_48], %47 {strides = array<i32>} : memref<1x8x16x16xf32, #tpu.memory_space<vmem>>, vector<1x1x16x16xf32>,
    %48 = vector.extract_strided_slice %27 {offsets = [0, 80], sizes = [16, 16], strides = [1, 1]} : vector<16x128xf32> to vector<16x16xf32>
    %c0_49 = arith.constant 0 : index
    %c5 = arith.constant 5 : index
    %c0_50 = arith.constant 0 : index
    %c0_51 = arith.constant 0 : index
    %49 = vector.load %arg5[%c0_49, %c5, %c0_50, %c0_51] : memref<1x8x16x16xf32, #tpu.memory_space<vmem>>, vector<1x1x16x16xf32>
    %50 = vector.shape_cast %49 : vector<1x1x16x16xf32> to vector<16x16xf32>
    %51 = vector.shape_cast %48 : vector<16x16xf32> to vector<1x1x16x16xf32>
    tpu.vector_store %arg5[%c0_49, %c5, %c0_50, %c0_51], %51 {strides = array<i32>} : memref<1x8x16x16xf32, #tpu.memory_space<vmem>>, vector<1x1x16x16xf32>,
    %52 = vector.extract_strided_slice %27 {offsets = [0, 96], sizes = [16, 16], strides = [1, 1]} : vector<16x128xf32> to vector<16x16xf32>
    %c0_52 = arith.constant 0 : index
    %c6 = arith.constant 6 : index
    %c0_53 = arith.constant 0 : index
    %c0_54 = arith.constant 0 : index
    %53 = vector.load %arg5[%c0_52, %c6, %c0_53, %c0_54] : memref<1x8x16x16xf32, #tpu.memory_space<vmem>>, vector<1x1x16x16xf32>
    %54 = vector.shape_cast %53 : vector<1x1x16x16xf32> to vector<16x16xf32>
    %55 = vector.shape_cast %52 : vector<16x16xf32> to vector<1x1x16x16xf32>
    tpu.vector_store %arg5[%c0_52, %c6, %c0_53, %c0_54], %55 {strides = array<i32>} : memref<1x8x16x16xf32, #tpu.memory_space<vmem>>, vector<1x1x16x16xf32>,
    %56 = vector.extract_strided_slice %27 {offsets = [0, 112], sizes = [16, 16], strides = [1, 1]} : vector<16x128xf32> to vector<16x16xf32>
    %c0_55 = arith.constant 0 : index
    %c7 = arith.constant 7 : index
    %c0_56 = arith.constant 0 : index
    %c0_57 = arith.constant 0 : index
    %57 = vector.load %arg5[%c0_55, %c7, %c0_56, %c0_57] : memref<1x8x16x16xf32, #tpu.memory_space<vmem>>, vector<1x1x16x16xf32>
    %58 = vector.shape_cast %57 : vector<1x1x16x16xf32> to vector<16x16xf32>
    %59 = vector.shape_cast %56 : vector<16x16xf32> to vector<1x1x16x16xf32>
    tpu.vector_store %arg5[%c0_55, %c7, %c0_56, %c0_57], %59 {strides = array<i32>} : memref<1x8x16x16xf32, #tpu.memory_space<vmem>>, vector<1x1x16x16xf32>,
    return
  }
  func.func @transform_0(%arg0: i32, %arg1: i32) -> (i32, i32, i32, i32) {
    %c0_i32 = arith.constant 0 : i32
    %c0_i32_0 = arith.constant 0 : i32
    %c0_i32_1 = arith.constant 0 : i32
    return %arg0, %c0_i32, %arg1, %c0_i32_0 : i32, i32, i32, i32
  }
  func.func @transform_1(%arg0: i32, %arg1: i32) -> (i32, i32, i32) {
    %c0_i32 = arith.constant 0 : i32
    %c0_i32_0 = arith.constant 0 : i32
    %c0_i32_1 = arith.constant 0 : i32
    %c0_i32_2 = arith.constant 0 : i32
    return %c0_i32, %c0_i32_0, %c0_i32_1 : i32, i32, i32
  }
  func.func @transform_2(%arg0: i32, %arg1: i32) -> (i32, i32) {
    %c0_i32 = arith.constant 0 : i32
    %c0_i32_0 = arith.constant 0 : i32
    %c0_i32_1 = arith.constant 0 : i32
    return %c0_i32, %c0_i32_0 : i32, i32
  }
  func.func @transform_3(%arg0: i32, %arg1: i32) -> (i32, i32, i32, i32) {
    %c0_i32 = arith.constant 0 : i32
    %c0_i32_0 = arith.constant 0 : i32
    %c0_i32_1 = arith.constant 0 : i32
    return %arg0, %c0_i32, %arg1, %c0_i32_0 : i32, i32, i32, i32
  }
}

</mosaic_0001>

<bundles_post_ra>
// kernel: tpu_custom_call.1
= control target key start
LH: loop header
LB: loop body
LE: loop exit
PB: predicated region body
PF: predicated region fallthrough
CT: control target
= control target key end

     0   :  { %8 = vsyncpa [#allocation3], 0  ;;  %s1360_s0 = inlined_call_operand.hbm [shape: f32[2,4,16,16], index: 0, kind: input, shape index: {}]   ;;  %s1361_s1 = inlined_call_operand.hbm [shape: f32[4,16,128], index: 1, kind: input, shape index: {}]   ;;  %s1362_s2 = inlined_call_operand.vmem [shape: f32[1,128], index: 2, kind: input, shape index: {}]   ;;  %s1363_s3 = inlined_call_operand.hbm [shape: f32[2,8,16,16], index: 3, kind: output, shape index: {}]  }
   0x1   :  { %10 = vsyncpa [#allocation3 + $0x1], 0 }
   0x2   :  { %11 = vsyncpa [#allocation6], 0 }
   0x3   :  { %12 = vsyncpa [#allocation4], 0 }
   0x4   :  { %14 = vsyncpa [#allocation4 + $0x1], 0  ;;  %s1116_s12 = smov 0   ;;  %s1118_s13 = smov 0  }
   0x5   :  { %s1120_s14 = smov 0   ;;  %s1122_s15 = smov 0  }
   0x6   :  { %s1124_s16 = smov 0   ;;  %s1126_s17 = smov 0  }
   0x7 LB: > { %s766_s18 = sadd.s32 4294967295, %s1080_s17   ;;  %s767_s19 = sadd.s32 4294967294, %s1080_s17   ;;  %s1080_s17 = sphi %s1126_s17, %s20_s17   ;;  %s1076_s16 = sphi %s1124_s16, %s1385_s16   ;;  %s1072_s15 = sphi %s1122_s15, %s1384_s15   ;;  %s1068_s14 = sphi %s1120_s14, %s1383_s14   ;;  %s1064_s13 = sphi %s1118_s13, %s1382_s13   ;;  %s1060_s12 = sphi %s1116_s12, %s1381_s12  }
   0x8   : > { %p54_p0 = scmp.ne.s32.totalorder %s1064_s13, %s1060_s12  ;;  %p1150_p1 = scmp.eq.s32.totalorder %s766_s18, 0 }
   0x9   : > { %p1154_p2 = scmp.eq.s32.totalorder %s766_s18, 1  ;;  %p128_p3 = scmp.eq.s32.totalorder %s767_s19, 1 }
   0xa   : > { %p1160_p4 = por %p1150_p1, %p54_p0  ;;  %p768_p5 = scmp.ge.s32.totalorder %s1080_s17, 1 }
   0xb   : > { %p1165_p6 = por %p128_p3, %p54_p0  ;;  %p135_p7 = scmp.lt.s32.totalorder %s1080_s17, 3 }
   0xc   : > { %s1369_s22 = scalar_select %p1160_p4, 1, 0 }
   0xd   : > { %s1370_s23 = scalar_select %p1165_p6, 1, 0 }
   0xe   : > { %p1170_p8 = pnand %p768_p5, %p135_p7  ;;  %s1082_s25 = smov [#allocation5]  }
   0xf   : > { %s147_s26 = sshll.u32 %s1082_s25, 4  ;;  %s32_s28 = sadd.s32 1, %s1076_s16  ;;  %s148_s26 = int_to_ptr.vmem [resolvable:$true] %s147_s26 }
  0x10   : > { %p866_p9 = pneg %p1170_p8  ;;  %s953_s29 = scalar_lea.vmem %s148_s26, 1024 }
  0x11   : > { %p954_p13 = scmp.ne.s32.totalorder %s148_s26, %s953_s29  ;;  %p961_p5 = scmp.lt.s32.totalorder %s148_s26, %s148_s26 }
  0x12   : > { %p1179_p11 = pnand %p866_p9, %p1150_p1  ;;  %p962_p7 = scmp.lt.s32.totalorder %s953_s29, %s953_s29 }
  0x14   : > { %p944_p12 = pneg %p1179_p11  ;;  %p963_p6 = por %p962_p7, %p961_p5 }
  0x16   : > { %p956_p0 = pnand %p954_p13, %p944_p12 }
  0x18   : > { %p957_p3 = pneg %p956_p0 }
  0x1a   : > { %p964_p4 = pnand %p963_p6, %p957_p3 }
  0x1c   : > { %967 = shalt.err (!%p964_p4)
}
  0x1d   : > { %s1365_s30 = smov 128   ;;  %s1366_s4 = smov 8  }
  0x1e   : > { %869 = dma.hbm_to_vmem [thread:$0]  (!%p1179_p11), %s1361_s1, 1024, %s148_s26, [#allocation6], %s1365_s30, %s1365_s30, %s1366_s4  }
  0x1f   : > { %p34_p4 = scmp.ge.s32.totalorder %s32_s28, 2  ;;  %s41_s7 = sadd.s32 1, %s1068_s14 }
  0x20   : > { %p48_p6 = scmp.ne.s32.totalorder %s1068_s14, %s1064_s13  ;;  %p49_p9 = scmp.eq.s32.totalorder %s1080_s17, 0 }
  0x21   : > { %s1387_s28 = smov (%p34_p4, %s32_s28), 0  ;;  %p879_p0 = scmp.lt.s32.totalorder %s1080_s17, 2 }
  0x22   : > { %p1200_p12 = por %p49_p9, %p48_p6  ;;  %p1206_p13 = por %p1154_p2, %p48_p6 }
  0x23   : > { %s36_s10 = ssub.s32 %s1076_s16, %s1387_s28  ;;  %s164_s11 = sand.u32 1, %s1068_s14  }
  0x24   : > { %p39_p11 = scmp.eq.s32.totalorder %s36_s10, 0  ;;  %s771_s18 = sshll.u32 %s164_s11, 6 }
  0x25   : > { %s812_s25 = sshll.u32 %s1076_s16, 10  ;;  %s168_s5 = scalar_lea.vmem [#allocation2], %s771_s18 }
  0x26   : > { %s1215_s19 = scalar_select %p39_p11, %s1068_s14, %s41_s7  }
  0x27   : > { %s176_s29 = scalar_lea.hbm %s1360_s0, %s812_s25  ;;  %s177_s6 = sshll.u32 %s168_s5, 4  ;;  %s178_s6 = int_to_ptr.vmem [resolvable:$true] %s177_s6 }
  0x28   : > { %p1223_p2 = pnand %p879_p0, %p1200_p12  ;;  %s165_s30 = scalar_lea.sflag [#allocation3], %s164_s11 }
  0x29   : > { %s981_s10 = scalar_lea.vmem %s178_s6, 1024  ;;  %s1085_s7 = smov [#allocation2]  }
  0x2a   : > { %p970_p3 = pneg %p1223_p2  ;;  %p982_p5 = scmp.ne.s32.totalorder %s178_s6, %s981_s10 }
  0x2b   : > { %s986_s4 = sshll.u32 %s1085_s7, 4  ;;  %s987_s4 = int_to_ptr.vmem [resolvable:$false] %s986_s4 }
  0x2c   : > { %p984_p7 = pnand %p982_p5, %p970_p3  ;;  %s988_s25 = scalar_lea.vmem %s987_s4, 2048 }
  0x2d   : > { %p989_p6 = scmp.lt.s32.totalorder %s178_s6, %s987_s4  ;;  %p990_p9 = scmp.lt.s32.totalorder %s988_s25, %s981_s10 }
  0x2e   : > { %p985_p4 = pneg %p984_p7 }
  0x2f   : > { %p991_p11 = por %p990_p9, %p989_p6 }
  0x31   : > { %p992_p10 = pnand %p991_p11, %p985_p4 }
  0x33   : > { %995 = shalt.err (!%p992_p10)
}
  0x34   : > { %s1376_s8 = smov 8   ;;  %s1377_s18 = smov 128  }
  0x35   : > { %873 = dma.hbm_to_vmem [thread:$0]  (!%p1223_p2), %s176_s29, 1024, %s178_s6, %s165_s30, %s1377_s18, %s1377_s18, %s1376_s8  }
  0x36   : > { %189 = sbr.rel (%p1170_p8) target bundleno = 427 (0x1ab), region = 32  ;;  %s1237_s11 = sand.u32 (!%p1170_p8), 1, %s1064_s13  }
  0x37   : > { %s775_s4 = sshll.u32 (!%p1170_p8), %s1237_s11, 6  ;;  %s192_s26 = scalar_lea.sflag (!%p1170_p8), [#allocation3], %s1237_s11 }
  0x38   : > { %s1241_s27 = scalar_lea.vmem (!%p1170_p8), [#allocation2], %s775_s4  ;;  %p1378_p10 = scmp.ne.s32.totalorder (!%p1170_p8), %s1369_s22, 0 }
  0x3b   : > { %1047 = dma.done.wait (%p1378_p10), %s192_s26, 1024  }
  0x3c   : > { %1049 = vsyncadd (%p1378_p10), %s192_s26, 4294966272 }
  0x3d   : > { %1051 = dma.done.wait (%p1150_p1), [#allocation6], 1024  }
  0x3e   : > { %1053 = vsyncadd (%p1150_p1), [#allocation6], 4294966272  ;;  %v233_v0 = vld [vmem:[#allocation5 + $0x18] sm:$0xff]  ;;  %v227_v1 = vld [vmem:[#allocation5 + $0x8] sm:$0xff]  ;;  %vm234_vm0 = vcmask 130048   ;;  %s777_s20 = sshll.u32 %s1237_s11, 7 }
  0x3f   : > { %v232_v2 = vld [vmem:[#allocation5 + $0x10] sm:$0xff]  ;;  %830 = vmatprep.subr.mxu0 %v233_v0  ;;  %837 = vmatprep.subr.mxu1 %v227_v1  ;;  %v226_v3 = vld [vmem:[#allocation5] sm:$0xff]  ;;  %v779_v6 = vld [vmem:[%s1241_s27 + $0x18] sm:$0xff]  ;;  %s1271_s30 = scalar_lea.vmem [#allocation7], %s777_s20  ;;  %s1086_s29 = smov 96  }
  0x40   : > { %v778_v4 = vld [vmem:[%s1241_s27 + $0x10] sm:$0xff]  ;;  %831 = vmatpush3.msra.mxu0 %v233_v0  ;;  %838 = vmatpush3.msra.mxu1 %v227_v1  ;;  %v224_v5 = vld [vmem:[%s1241_s27] sm:$0xff]  ;;  %v225_v7 = vld [vmem:[%s1241_s27 + $0x8] sm:$0xff]  ;;  %s1087_s5 = smov 112   ;;  %s1088_s6 = smov 80  }
  0x41   : > { %832 = vmatprep.subr.mxu0 %v232_v2  ;;  %839 = vmatprep.subr.mxu1 %v226_v3  ;;  %v402_v8 = vld [vmem:[#allocation5 + $0x28] sm:$0xff]  ;;  %v491_v9 = vld [vmem:[#allocation5 + $0x38] sm:$0xff]  ;;  %v401_v10 = vld [vmem:[#allocation5 + $0x20] sm:$0xff]  ;;  %s1089_s21 = smov 64   ;;  %s1090_s10 = smov 48  }
  0x42   : > { %833 = vmatpush3.msra.mxu0 %v232_v2  ;;  %834 = vmatprep.mubr.msk.f32.mxu0 %vm234_vm0, %v778_v4  ;;  %v784_v11 = vld [vmem:[%s1241_s27 + $0x20] sm:$0xff]  ;;  %v490_v12 = vld [vmem:[#allocation5 + $0x30] sm:$0xff]  ;;  %v785_v13 = vld [vmem:[%s1241_s27 + $0x28] sm:$0xff]  ;;  %s1091_s7 = smov 32   ;;  %s1092_s25 = smov 16  }
  0x43   : > { %840 = vmatpush3.msra.mxu1 %v226_v3  ;;  %841 = vmatprep.mubr.msk.f32.mxu1 %vm234_vm0, %v224_v5  ;;  %v788_v14 = vld [vmem:[%s1241_s27 + $0x30] sm:$0xff]  ;;  %v789_v15 = vld [vmem:[%s1241_s27 + $0x38] sm:$0xff]  ;;  %v792_v25 = vld [vmem:[%s1362_s2] ss:$0 sm:$0xff]  ;;  %s813_s8 = sshll.u32 %s1072_s15, 11  ;;  %s669_s18 = sshll.u32 %s1271_s30, 4  ;;  %s1308_s18 = int_to_ptr.vmem [resolvable:$true] %s669_s18 }
  0x44   : > { %835 = vmatmul.mubr.msk.f32.vlgmr.msra.gmra.mxu0 %vm234_vm0, %v779_v6  ;;  %842 = vmatmul.mubr.msk.f32.vlgmr.msra.gmra.mxu1 %vm234_vm0, %v225_v7  ;;  %s1306_s27 = scalar_lea.hbm %s1363_s3, %s813_s8  ;;  %s654_s15 = scalar_lea.sflag [#allocation4], %s1237_s11 }
  0x45   : > { %844 = vmatprep.subr.mxu0 %v402_v8  ;;  %851 = vmatprep.subr.mxu1 %v491_v9  ;;  %s996_s20 = scalar_lea.vmem %s1308_s18, 2048  ;;  %s1093_s22 = smov [#allocation7]  }
  0x46   : > { %845 = vmatpush3.msra.mxu0 %v402_v8  ;;  %852 = vmatpush3.msra.mxu1 %v491_v9  ;;  %p997_p1 = scmp.ne.s32.totalorder %s1308_s18, %s996_s20  ;;  %s1000_s24 = sshll.u32 %s1093_s22, 4  ;;  %s1001_s24 = int_to_ptr.vmem [resolvable:$false] %s1000_s24 }
  0x47   : > { %846 = vmatprep.subr.mxu0 %v401_v10  ;;  %848 = vmatprep.mubr.msk.f32.mxu0 %vm234_vm0, %v784_v11  ;;  %p1003_p0 = scmp.lt.s32.totalorder %s1308_s18, %s1001_s24 }
  0x48   : > { %847 = vmatpush3.msra.mxu0 %v401_v10  ;;  %853 = vmatprep.subr.mxu1 %v490_v12  ;;  %p998_p8 = pnand %p997_p1, %p1206_p13 }
  0x49   : > { %849 = vmatmul.mubr.msk.f32.vlgmr.msra.gmra.mxu0 %vm234_vm0, %v785_v13  ;;  %854 = vmatpush3.msra.mxu1 %v490_v12 }
  0x4a   : > { %855 = vmatprep.mubr.msk.f32.mxu1 %vm234_vm0, %v788_v14  ;;  %p999_p12 = pneg %p998_p8 }
  0x4b   : > { %856 = vmatmul.mubr.msk.f32.vlgmr.msra.gmra.mxu1 %vm234_vm0, %v789_v15 }
 0x104   : > { %v836_v16 = vpop.f32.mrf.mxu0  ;;  %v843_v17 = vpop.f32.mrf.mxu1 }
 0x105   : > { %v394_v20 = vadd.f32 %v843_v17, %v836_v16 }
 0x106   : > { %v307_v18 = vpop.f32.mrf.mxu0  ;;  %v388_v19 = vpop.f32.mrf.mxu1 }
 0x107   : > { %v389_v22 = vadd.f32 %v388_v19, %v307_v18 }
 0x109   : > { %v850_v21 = vpop.f32.mrf.mxu0 }
 0x10a   : > { %v485_v23 = vadd.f32 %v850_v21, %v394_v20 }
 0x10b   : > { %v857_v24 = vpop.f32.mrf.mxu1  ;;  %v475_v26 = vpop.f32.mrf.mxu0 }
 0x10c   : > { %v574_v27 = vadd.f32 %v857_v24, %v485_v23  ;;  %v484_v28 = vadd.f32 %v475_v26, %v389_v22 }
 0x10d   : > { %v564_v29 = vpop.f32.mrf.mxu1 }
 0x10e   : > { %v583_v30 = vadd.f32 %v792_v25, %v574_v27  ;;  %v573_v31 = vadd.f32 %v564_v29, %v484_v28 }
 0x110   : > { %v585_v32 = vmax.f32 %v583_v30, 0.0  ;;  %v582_v33 = vadd.f32 %v792_v25, %v573_v31 }
 0x112   : > { %587 = vst.msk [vmem:[%s1271_s30 + $0x8] sm:$0xff] %vm234_vm0, %v585_v32  ;;  %v584_v34 = vmax.f32 %v582_v33, 0.0  ;;  %601 = vrot.lane.b32.xlu1 %v585_v32, %s1086_s29  ;;  %592 = vrot.lane.b32.xlu0 %v585_v32, %s1087_s5 }
 0x114   : > { %586 = vst.msk [vmem:[%s1271_s30] sm:$0xff] %vm234_vm0, %v584_v34 }
 0x116   : > { %610 = vrot.lane.b32.xlu1 %v585_v32, %s1088_s6  ;;  %590 = vrot.lane.b32.xlu0 %v584_v34, %s1087_s5 }
 0x11a   : > { %619 = vrot.lane.b32.xlu1 %v585_v32, %s1089_s21  ;;  %608 = vrot.lane.b32.xlu0 %v584_v34, %s1088_s6 }
 0x11e   : > { %628 = vrot.lane.b32.xlu1 %v585_v32, %s1090_s10  ;;  %617 = vrot.lane.b32.xlu0 %v584_v34, %s1089_s21 }
 0x122   : > { %637 = vrot.lane.b32.xlu1 %v585_v32, %s1091_s7  ;;  %626 = vrot.lane.b32.xlu0 %v584_v34, %s1090_s10 }
 0x126   : > { %599 = vrot.lane.b32.xlu1 %v584_v34, %s1086_s29  ;;  %635 = vrot.lane.b32.xlu0 %v584_v34, %s1091_s7  ;;  %s1002_s29 = scalar_lea.vmem %s1001_s24, 4096 }
 0x127   : > { %p1004_p2 = scmp.lt.s32.totalorder %s1002_s29, %s996_s20 }
 0x129   : > { %p1005_p3 = por %p1004_p2, %p1003_p0 }
 0x12a   : > { %646 = vrot.lane.b32.xlu1 %v585_v32, %s1092_s25  ;;  %644 = vrot.lane.b32.xlu0 %v584_v34, %s1092_s25 }
 0x12b   : > { %p1006_p5 = pnand %p1005_p3, %p999_p12 }
 0x184   : > { %v602_v35 = vpop.permute.xlu1 %601  ;;  %v593_v36 = vpop.permute.xlu0 %592 }
 0x185   : > { %796 = vst.msk [vmem:[%s1271_s30 + $0x28] sm:$0xff] %vm234_vm0, %v602_v35  ;;  %794 = vst.msk [vmem:[%s1271_s30 + $0x18] sm:$0xff] %vm234_vm0, %v593_v36 }
 0x188   : > { %v611_v37 = vpop.permute.xlu1 %610  ;;  %v591_v38 = vpop.permute.xlu0 %590 }
 0x189   : > { %798 = vst.msk [vmem:[%s1271_s30 + $0x38] sm:$0xff] %vm234_vm0, %v611_v37  ;;  %793 = vst.msk [vmem:[%s1271_s30 + $0x10] sm:$0xff] %vm234_vm0, %v591_v38 }
 0x18c   : > { %v620_v39 = vpop.permute.xlu1 %619  ;;  %v609_v40 = vpop.permute.xlu0 %608 }
 0x18d   : > { %800 = vst.msk [vmem:[%s1271_s30 + $0x48] sm:$0xff] %vm234_vm0, %v620_v39  ;;  %797 = vst.msk [vmem:[%s1271_s30 + $0x30] sm:$0xff] %vm234_vm0, %v609_v40 }
 0x190   : > { %v629_v41 = vpop.permute.xlu1 %628  ;;  %v618_v42 = vpop.permute.xlu0 %617 }
 0x191   : > { %802 = vst.msk [vmem:[%s1271_s30 + $0x58] sm:$0xff] %vm234_vm0, %v629_v41  ;;  %799 = vst.msk [vmem:[%s1271_s30 + $0x40] sm:$0xff] %vm234_vm0, %v618_v42 }
 0x194   : > { %v638_v43 = vpop.permute.xlu1 %637  ;;  %v627_v44 = vpop.permute.xlu0 %626 }
 0x195   : > { %804 = vst.msk [vmem:[%s1271_s30 + $0x68] sm:$0xff] %vm234_vm0, %v638_v43  ;;  %801 = vst.msk [vmem:[%s1271_s30 + $0x50] sm:$0xff] %vm234_vm0, %v627_v44 }
 0x198   : > { %v600_v45 = vpop.permute.xlu1 %599  ;;  %v636_v46 = vpop.permute.xlu0 %635 }
 0x199   : > { %795 = vst.msk [vmem:[%s1271_s30 + $0x20] sm:$0xff] %vm234_vm0, %v600_v45  ;;  %803 = vst.msk [vmem:[%s1271_s30 + $0x60] sm:$0xff] %vm234_vm0, %v636_v46 }
 0x19c   : > { %v647_v47 = vpop.permute.xlu1 %646  ;;  %v645_v48 = vpop.permute.xlu0 %644 }
 0x19d   : > { %806 = vst.msk [vmem:[%s1271_s30 + $0x78] sm:$0xff] %vm234_vm0, %v647_v47  ;;  %805 = vst.msk [vmem:[%s1271_s30 + $0x70] sm:$0xff] %vm234_vm0, %v645_v48 }
 0x19e   : > { %1009 = shalt.err (!%p1006_p5)
}
 0x19f   : > { %s1010_s30 = scalar_lea.hbm %s1306_s27, 2048  ;;  %s1014_s21 = scalar_lea.hbm %s1363_s3, 4096 }
 0x1a0   : > { %p1011_p7 = scmp.ne.s32.totalorder %s1306_s27, %s1010_s30  ;;  %p1015_p9 = scmp.lt.s32.totalorder %s1306_s27, %s1363_s3 }
 0x1a1   : > { %p1016_p11 = scmp.lt.s32.totalorder %s1014_s21, %s1010_s30 }
 0x1a2   : > { %p1012_p4 = pnand %p1011_p7, %p1206_p13 }
 0x1a3   : > { %p1017_p10 = por %p1016_p11, %p1015_p9 }
 0x1a4   : > { %p1013_p6 = pneg %p1012_p4 }
 0x1a6   : > { %p1018_p1 = pnand %p1017_p10, %p1013_p6 }
 0x1a8   : > { %1021 = shalt.err (!%p1018_p1)
}
 0x1a9   : > { %s1094_s25 = smov 128   ;;  %s1095_s8 = smov 8  }
 0x1aa   : > { %864 = dma.vmem_to_hbm [thread:$0]  (%p1206_p13), %s1308_s18, 2048, %s1306_s27, %s654_s15, %s1094_s25, %s1094_s25, %s1095_s8  }
 0x1ab PF: > { %s684_s4 = sand.u32 1, %s1060_s12   ;;  %p1379_p8 = scmp.ne.s32.totalorder %s1370_s23, 0 }
 0x1ac   : > { %p1380_p12 = scmp.ge.s32.totalorder %s1080_s17, 2  ;;  %s685_s26 = scalar_lea.sflag [#allocation4], %s684_s4 }
 0x1ae   : > { %p875_p0 = pnand %p1380_p12, %p1379_p8 }
 0x1b0   : > { %p876_p2 = pneg %p875_p0 }
 0x1b2   : > { %1055 = dma.done.wait (%p876_p2), %s685_s26, 2048  }
 0x1b3   : > { %1057 = vsyncadd (%p876_p2), %s685_s26, 4294965248  ;;  %s20_s17 = sadd.s32 1, %s1080_s17   ;;  %s1381_s12 = smov %s1064_s13 }
 0x1b4   : > { %p17_p3 = scmp.ge.s32.totalorder %s20_s17, 4   ;;  %s1382_s13 = smov %s1068_s14 }
 0x1b5   : > { %s1383_s14 = smov %s1215_s19  ;;  %s1384_s15 = smov %s1076_s16 }
 0x1b6   : > { %s1385_s16 = smov %s1387_s28  ;;  %19 = sbr.rel (!%p17_p3) target bundleno = 7 (0x7), region = 94 }
 0x1bb   :  { %690 = vsyncpa [#allocation3], 1 }
 0x1bc   :  { %692 = vsyncpa [#allocation3 + $0x1], 1 }
 0x1bd   :  { %693 = vsyncpa [#allocation6], 1 }
 0x1be   :  { %694 = vsyncpa [#allocation4], 1 }
 0x1bf   :  { %696 = vsyncpa [#allocation4 + $0x1], 1 }

</bundles_post_ra>
